<compile_context>
chip_gen: v6e
topology: v6e:2x2x1
jax: 0.10.0
libtpu: 0.0.40
codegen_flags: <defaults>
</compile_context>

<pallas_src>
import functools

import jax
import jax.numpy as jnp
from jax.experimental import pallas as pl
from jax.experimental.pallas import tpu as pltpu


def _dice_partial_kernel(x_ref, t_ref, i_ref, z_ref, y_ref, *,
                         n_classes, hw, tile_hw, n_tiles, n_splits,
                         padded_tiles, apply_softmax):
    """Accumulate per-class partial sums for one (batch n, split s, pixel tile t)."""
    s_idx = pl.program_id(1)
    t_idx = pl.program_id(2)
    g = t_idx * n_splits + s_idx                      # global pixel-tile index

    @pl.when(t_idx == 0)
    def _():
        i_ref[...] = jnp.zeros_like(i_ref)
        z_ref[...] = jnp.zeros_like(z_ref)
        y_ref[...] = jnp.zeros_like(y_ref)

    def accumulate(masked):
        score = x_ref[...].astype(jnp.float32)                        # (C, T)
        tgt = t_ref[...].astype(jnp.int32)                            # (1, T)

        if apply_softmax:
            m = jnp.max(score, axis=0, keepdims=True)
            e = jnp.exp(score - m)
            # one reciprocal per pixel instead of C divides per pixel
            inv = pl.reciprocal(jnp.sum(e, axis=0, keepdims=True), approx=False)
            score = e * inv

        # fused one-hot: boolean class mask, no float one-hot materialization
        class_ids = jax.lax.broadcasted_iota(jnp.int32, (n_classes, tile_hw), 0)
        cls_mask = tgt == class_ids                                   # (C, T) bool

        if masked:
            # ragged last tile: lanes past HW hold garbage (possibly NaN/Inf),
            # so use where/& (not multiply) to kill them.
            lane = (jax.lax.broadcasted_iota(jnp.int32, (1, tile_hw), 1)
                    + g * tile_hw)
            valid = lane < hw                                         # (1, T) bool
            score = jnp.where(valid, score, 0.0)
            cls_mask = cls_mask & valid

        i_ref[...] += jnp.sum(jnp.where(cls_mask, score, 0.0),
                              axis=1, keepdims=True)                  # intersect
        z_ref[...] += jnp.sum(score * score, axis=1, keepdims=True)   # z_sum
        y_ref[...] += jnp.sum(jnp.where(cls_mask, 1.0, 0.0),
                              axis=1, keepdims=True)                  # y_sum (t*t == t)

    ragged = (hw % tile_hw) != 0
    if (not ragged) and padded_tiles == n_tiles:
        # fast path: every grid step is a real, full tile -> no masking code at all
        accumulate(masked=False)
    elif not ragged:
        @pl.when(g < n_tiles)            # skip phantom (split-padding) steps
        def _():
            accumulate(masked=False)
    else:
        @pl.when(g == n_tiles - 1)       # ragged last tile -> lane-validity mask
        def _():
            accumulate(masked=True)

        @pl.when(g < n_tiles - 1)        # interior tiles -> unmasked fast path
        def _():
            accumulate(masked=False)


def _choose_tile_hw(hw, n_classes, x_bytes, t_bytes, apply_softmax,
                    max_tile=128 * 1024, vmem_budget=28 * 1024 * 1024):
    """Largest pixel tile (multiple of 512 lanes) within a VMEM budget that counts
    both the double-buffered input blocks and the live f32 (C, T) elementwise
    intermediates Mosaic materializes in VMEM (safe on v5e/v6e/v7x)."""
    n_temps = 6 if apply_softmax else 4
    per_lane = 2 * (n_classes * x_bytes + t_bytes) + n_temps * n_classes * 4
    cap = max(128, vmem_budget // per_lane)
    tile = min(max_tile, cap)
    if hw <= tile:
        return hw                        # single full-width block (always layout-legal)
    return max(512, (tile // 512) * 512)


def dice_loss(inputs, target, weight=None, softmax=False, tile_hw=None):
    """inputs: (N, C, H, W) float (any float dtype), target: (N, H, W) int labels in [0, C)."""
    N, C, H, W = inputs.shape
    HW = H * W

    # No transpose, no pad, no host f32 upcast: stream the native layout/dtype.
    x3 = inputs.reshape(N, C, HW)
    # int8 labels only safe while labels are in [0, C) (no ignore_index-style values).
    t_dtype = jnp.int8 if C <= 127 else jnp.int32
    t3 = target.reshape(N, 1, HW).astype(t_dtype)

    if tile_hw is None:
        tile_hw = _choose_tile_hw(HW, C, x3.dtype.itemsize, t3.dtype.itemsize, softmax)
    n_tiles = pl.cdiv(HW, tile_hw)

    # v7x has 2 TensorCores: when N == 1 the batch axis cannot feed both, so
    # split the pixel-tile range over a second parallel grid axis.
    n_splits = 2 if (N == 1 and n_tiles > 1) else 1
    tiles_per_split = pl.cdiv(n_tiles, n_splits)
    padded_tiles = tiles_per_split * n_splits

    if padded_tiles == n_tiles:
        def tile_of(s, t):
            return t * n_splits + s
    else:
        # phantom split-padding steps re-read (and ignore) the last real block
        def tile_of(s, t):
            return jnp.minimum(t * n_splits + s, n_tiles - 1)

    kernel = functools.partial(
        _dice_partial_kernel, n_classes=C, hw=HW, tile_hw=tile_hw,
        n_tiles=n_tiles, n_splits=n_splits, padded_tiles=padded_tiles,
        apply_softmax=softmax)

    part_shape = jax.ShapeDtypeStruct((N, n_splits, C, 1), jnp.float32)
    part_spec = pl.BlockSpec((pl.Squeezed(), pl.Squeezed(), C, 1),
                             lambda n, s, t: (n, s, 0, 0))

    i_part, z_part, y_part = pl.pallas_call(
        kernel,
        out_shape=(part_shape, part_shape, part_shape),
        grid_spec=pltpu.PrefetchScalarGridSpec(
            num_scalar_prefetch=0,
            grid=(N, n_splits, tiles_per_split),
            in_specs=[
                pl.BlockSpec((pl.Squeezed(), C, tile_hw),
                             lambda n, s, t: (n, 0, tile_of(s, t))),
                pl.BlockSpec((pl.Squeezed(), 1, tile_hw),
                             lambda n, s, t: (n, 0, tile_of(s, t))),
            ],
            out_specs=(part_spec, part_spec, part_spec),
        ),
        compiler_params=pltpu.CompilerParams(
            dimension_semantics=("parallel", "parallel", "arbitrary"),
            vmem_limit_bytes=48 * 1024 * 1024),
    )(x3, t3)

    # Tiny finalize on (C,)-sized vectors in plain JAX (weight folded here,
    # not streamed every grid step).
    isec = jnp.sum(i_part, axis=(0, 1)).reshape(C)
    zsum = jnp.sum(z_part, axis=(0, 1)).reshape(C)
    ysum = jnp.sum(y_part, axis=(0, 1)).reshape(C)

    w = (jnp.ones((C,), jnp.float32) if weight is None
         else jnp.asarray(weight, jnp.float32).reshape(C))
    smooth = 1e-05
    dice = 1.0 - (2.0 * isec + smooth) / (zsum + ysum + smooth)
    # TODO(synk): the PyTorch module also builds a `class_wise_dice` Python list via
    # .item(); it is not part of the returned loss so it is omitted here.
    return jnp.sum(dice * w) / C


def _dice_loss_ref(inputs, target, weight=None, softmax=False):
    """Pure-JAX reference matching the PyTorch module exactly."""
    n_classes = inputs.shape[1]
    if softmax:
        inputs = jax.nn.softmax(inputs, axis=1)
    onehot = jnp.stack([(target == i).astype(jnp.float32)
                        for i in range(n_classes)], axis=1)
    if weight is None:
        weight = [1.0] * n_classes
    smooth = 1e-05
    loss = 0.0
    for i in range(n_classes):
        s = inputs[:, i]
        t = onehot[:, i]
        intersect = jnp.sum(s * t)
        y_sum = jnp.sum(t * t)
        z_sum = jnp.sum(s * s)
        dice = 1.0 - (2.0 * intersect + smooth) / (z_sum + y_sum + smooth)
        loss = loss + dice * weight[i]
    return loss / n_classes


if __name__ == "__main__":
    key = jax.random.PRNGKey(0)
    k1, k2, k3, k4 = jax.random.split(key, 4)

    # Case 1: module-default small shapes, both softmax paths (single full tile,
    # unmasked fast path, no split).
    N, C, H, W = 2, 4, 16, 16
    inputs = jax.random.normal(k1, (N, C, H, W), dtype=jnp.float32)
    target = jax.random.randint(k2, (N, H, W), 0, C, dtype=jnp.int32)

    out = jax.block_until_ready(dice_loss(inputs, target, softmax=False))
    ref = _dice_loss_ref(inputs, target, softmax=False)
    assert jnp.allclose(out, ref, rtol=1e-5, atol=1e-5), (out, ref)

    out_sm = jax.block_until_ready(dice_loss(inputs, target, softmax=True))
    ref_sm = _dice_loss_ref(inputs, target, softmax=True)
    assert jnp.allclose(out_sm, ref_sm, rtol=1e-5, atol=1e-5), (out_sm, ref_sm)

    # Case 2: N=1 (exercises the 2-way split / phantom-step clamp), odd tile count,
    # ragged last pixel tile (no-pad valid-lane mask) + class weights + softmax.
    N2, C2, H2, W2 = 1, 3, 40, 40            # HW = 1600; tile_hw=640 -> 3 tiles, last ragged
    inputs2 = jax.random.normal(k3, (N2, C2, H2, W2), dtype=jnp.float32)
    target2 = jax.random.randint(k4, (N2, H2, W2), 0, C2, dtype=jnp.int32)
    w2 = [0.5, 1.0, 2.0]
    out2 = jax.block_until_ready(
        dice_loss(inputs2, target2, weight=w2, softmax=True, tile_hw=640))
    ref2 = _dice_loss_ref(inputs2, target2, weight=w2, softmax=True)
    assert jnp.allclose(out2, ref2, rtol=1e-5, atol=1e-5), (out2, ref2)

    # Case 2b: same inputs, non-softmax path through the split/ragged machinery.
    out2b = jax.block_until_ready(
        dice_loss(inputs2, target2, weight=w2, softmax=False, tile_hw=640))
    ref2b = _dice_loss_ref(inputs2, target2, weight=w2, softmax=False)
    assert jnp.allclose(out2b, ref2b, rtol=1e-5, atol=1e-5), (out2b, ref2b)

    print("KERNEL_OK")
</pallas_src>

<mosaic_0001>
module attributes {stable_mosaic.version = 11 : i64} {
  func.func @_dice_partial_kernel(%arg0: i32, %arg1: i32, %arg2: i32, %arg3: memref<1x4x256xf32, #tpu.memory_space<vmem>>, %arg4: memref<1x1x256xi8, #tpu.memory_space<vmem>>, %arg5: memref<1x1x4x1xf32, #tpu.memory_space<vmem>>, %arg6: memref<1x1x4x1xf32, #tpu.memory_space<vmem>>, %arg7: memref<1x1x4x1xf32, #tpu.memory_space<vmem>>) attributes {dimension_semantics = [#tpu.dimension_semantics<parallel>, #tpu.dimension_semantics<parallel>, #tpu.dimension_semantics<arbitrary>], iteration_bounds = array<i64: 2, 1, 1>, scalar_prefetch = 0 : i64, scratch_operands = 0 : i64, tpu.core_type = #tpu.core_type<tc>, window_params = [{transform_indices = @transform_0, window_bounds = array<i64: 1, 4, 256>}, {transform_indices = @transform_1, window_bounds = array<i64: 1, 1, 256>}, {transform_indices = @transform_2, window_bounds = array<i64: 1, 1, 4, 1>}, {transform_indices = @transform_3, window_bounds = array<i64: 1, 1, 4, 1>}, {transform_indices = @transform_4, window_bounds = array<i64: 1, 1, 4, 1>}]} {
    %c0_i32 = arith.constant 0 : i32
    %0 = arith.cmpi eq, %arg2, %c0_i32 : i32
    %1 = arith.extui %0 : i1 to i32
    %c0_i32_0 = arith.constant 0 : i32
    %2 = arith.cmpi ne, %1, %c0_i32_0 : i32
    scf.if %2 {
      %cst_35 = arith.constant 0.000000e+00 : f32
      %41 = vector.broadcast %cst_35 : f32 to vector<4x1xf32>
      %c0_36 = arith.constant 0 : index
      %c0_37 = arith.constant 0 : index
      %c0_38 = arith.constant 0 : index
      %c0_39 = arith.constant 0 : index
      %42 = vector.load %arg5[%c0_36, %c0_37, %c0_38, %c0_39] : memref<1x1x4x1xf32, #tpu.memory_space<vmem>>, vector<1x1x4x1xf32>
      %43 = vector.shape_cast %42 : vector<1x1x4x1xf32> to vector<4x1xf32>
      %44 = vector.shape_cast %41 : vector<4x1xf32> to vector<1x1x4x1xf32>
      tpu.vector_store %arg5[%c0_36, %c0_37, %c0_38, %c0_39], %44 {strides = array<i32>} : memref<1x1x4x1xf32, #tpu.memory_space<vmem>>, vector<1x1x4x1xf32>,
      %cst_40 = arith.constant 0.000000e+00 : f32
      %45 = vector.broadcast %cst_40 : f32 to vector<4x1xf32>
      %c0_41 = arith.constant 0 : index
      %c0_42 = arith.constant 0 : index
      %c0_43 = arith.constant 0 : index
      %c0_44 = arith.constant 0 : index
      %46 = vector.load %arg6[%c0_41, %c0_42, %c0_43, %c0_44] : memref<1x1x4x1xf32, #tpu.memory_space<vmem>>, vector<1x1x4x1xf32>
      %47 = vector.shape_cast %46 : vector<1x1x4x1xf32> to vector<4x1xf32>
      %48 = vector.shape_cast %45 : vector<4x1xf32> to vector<1x1x4x1xf32>
      tpu.vector_store %arg6[%c0_41, %c0_42, %c0_43, %c0_44], %48 {strides = array<i32>} : memref<1x1x4x1xf32, #tpu.memory_space<vmem>>, vector<1x1x4x1xf32>,
      %cst_45 = arith.constant 0.000000e+00 : f32
      %49 = vector.broadcast %cst_45 : f32 to vector<4x1xf32>
      %c0_46 = arith.constant 0 : index
      %c0_47 = arith.constant 0 : index
      %c0_48 = arith.constant 0 : index
      %c0_49 = arith.constant 0 : index
      %50 = vector.load %arg7[%c0_46, %c0_47, %c0_48, %c0_49] : memref<1x1x4x1xf32, #tpu.memory_space<vmem>>, vector<1x1x4x1xf32>
      %51 = vector.shape_cast %50 : vector<1x1x4x1xf32> to vector<4x1xf32>
      %52 = vector.shape_cast %49 : vector<4x1xf32> to vector<1x1x4x1xf32>
      tpu.vector_store %arg7[%c0_46, %c0_47, %c0_48, %c0_49], %52 {strides = array<i32>} : memref<1x1x4x1xf32, #tpu.memory_space<vmem>>, vector<1x1x4x1xf32>,
    } else {
    }
    %c0 = arith.constant 0 : index
    %c0_1 = arith.constant 0 : index
    %c0_2 = arith.constant 0 : index
    %3 = vector.load %arg3[%c0, %c0_1, %c0_2] : memref<1x4x256xf32, #tpu.memory_space<vmem>>, vector<1x4x256xf32>
    %4 = vector.shape_cast %3 : vector<1x4x256xf32> to vector<4x256xf32>
    %c0_3 = arith.constant 0 : index
    %c0_4 = arith.constant 0 : index
    %c0_5 = arith.constant 0 : index
    %5 = vector.load %arg4[%c0_3, %c0_4, %c0_5] : memref<1x1x256xi8, #tpu.memory_space<vmem>>, vector<1x1x256xi8>
    %6 = vector.shape_cast %5 : vector<1x1x256xi8> to vector<1x256xi8>
    %7 = arith.extsi %6 : vector<1x256xi8> to vector<1x256xi32>
    %8 = tpu.iota {dimensions = array<i32: 0>} : vector<4x256xi32>
    %9 = vector.broadcast %7 : vector<1x256xi32> to vector<4x256xi32>
    %10 = arith.cmpi eq, %9, %8 : vector<4x256xi32>
    %c0_6 = arith.constant 0 : index
    %c0_7 = arith.constant 0 : index
    %c0_8 = arith.constant 0 : index
    %c0_9 = arith.constant 0 : index
    %11 = vector.load %arg5[%c0_6, %c0_7, %c0_8, %c0_9] : memref<1x1x4x1xf32, #tpu.memory_space<vmem>>, vector<1x1x4x1xf32>
    %12 = vector.shape_cast %11 : vector<1x1x4x1xf32> to vector<4x1xf32>
    %cst = arith.constant 0.000000e+00 : f32
    %13 = vector.broadcast %cst : f32 to vector<4x256xf32>
    %14 = arith.select %10, %4, %13 : vector<4x256xi1>, vector<4x256xf32>
    %cst_10 = arith.constant dense<0.000000e+00> : vector<4xf32>
    %15 = vector.multi_reduction <add>, %14, %cst_10 [1] : vector<4x256xf32> to vector<4xf32>
    %16 = vector.shape_cast %15 : vector<4xf32> to vector<4x1xf32>
    %17 = arith.addf %12, %16 : vector<4x1xf32>
    %c0_11 = arith.constant 0 : index
    %c0_12 = arith.constant 0 : index
    %c0_13 = arith.constant 0 : index
    %c0_14 = arith.constant 0 : index
    %18 = vector.load %arg5[%c0_11, %c0_12, %c0_13, %c0_14] : memref<1x1x4x1xf32, #tpu.memory_space<vmem>>, vector<1x1x4x1xf32>
    %19 = vector.shape_cast %18 : vector<1x1x4x1xf32> to vector<4x1xf32>
    %20 = vector.shape_cast %17 : vector<4x1xf32> to vector<1x1x4x1xf32>
    tpu.vector_store %arg5[%c0_11, %c0_12, %c0_13, %c0_14], %20 {strides = array<i32>} : memref<1x1x4x1xf32, #tpu.memory_space<vmem>>, vector<1x1x4x1xf32>,
    %c0_15 = arith.constant 0 : index
    %c0_16 = arith.constant 0 : index
    %c0_17 = arith.constant 0 : index
    %c0_18 = arith.constant 0 : index
    %21 = vector.load %arg6[%c0_15, %c0_16, %c0_17, %c0_18] : memref<1x1x4x1xf32, #tpu.memory_space<vmem>>, vector<1x1x4x1xf32>
    %22 = vector.shape_cast %21 : vector<1x1x4x1xf32> to vector<4x1xf32>
    %23 = arith.mulf %4, %4 : vector<4x256xf32>
    %cst_19 = arith.constant dense<0.000000e+00> : vector<4xf32>
    %24 = vector.multi_reduction <add>, %23, %cst_19 [1] : vector<4x256xf32> to vector<4xf32>
    %25 = vector.shape_cast %24 : vector<4xf32> to vector<4x1xf32>
    %26 = arith.addf %22, %25 : vector<4x1xf32>
    %c0_20 = arith.constant 0 : index
    %c0_21 = arith.constant 0 : index
    %c0_22 = arith.constant 0 : index
    %c0_23 = arith.constant 0 : index
    %27 = vector.load %arg6[%c0_20, %c0_21, %c0_22, %c0_23] : memref<1x1x4x1xf32, #tpu.memory_space<vmem>>, vector<1x1x4x1xf32>
    %28 = vector.shape_cast %27 : vector<1x1x4x1xf32> to vector<4x1xf32>
    %29 = vector.shape_cast %26 : vector<4x1xf32> to vector<1x1x4x1xf32>
    tpu.vector_store %arg6[%c0_20, %c0_21, %c0_22, %c0_23], %29 {strides = array<i32>} : memref<1x1x4x1xf32, #tpu.memory_space<vmem>>, vector<1x1x4x1xf32>,
    %c0_24 = arith.constant 0 : index
    %c0_25 = arith.constant 0 : index
    %c0_26 = arith.constant 0 : index
    %c0_27 = arith.constant 0 : index
    %30 = vector.load %arg7[%c0_24, %c0_25, %c0_26, %c0_27] : memref<1x1x4x1xf32, #tpu.memory_space<vmem>>, vector<1x1x4x1xf32>
    %31 = vector.shape_cast %30 : vector<1x1x4x1xf32> to vector<4x1xf32>
    %cst_28 = arith.constant 1.000000e+00 : f32
    %cst_29 = arith.constant 0.000000e+00 : f32
    %32 = vector.broadcast %cst_28 : f32 to vector<4x256xf32>
    %33 = vector.broadcast %cst_29 : f32 to vector<4x256xf32>
    %34 = arith.select %10, %32, %33 : vector<4x256xi1>, vector<4x256xf32>
    %cst_30 = arith.constant dense<0.000000e+00> : vector<4xf32>
    %35 = vector.multi_reduction <add>, %34, %cst_30 [1] : vector<4x256xf32> to vector<4xf32>
    %36 = vector.shape_cast %35 : vector<4xf32> to vector<4x1xf32>
    %37 = arith.addf %31, %36 : vector<4x1xf32>
    %c0_31 = arith.constant 0 : index
    %c0_32 = arith.constant 0 : index
    %c0_33 = arith.constant 0 : index
    %c0_34 = arith.constant 0 : index
    %38 = vector.load %arg7[%c0_31, %c0_32, %c0_33, %c0_34] : memref<1x1x4x1xf32, #tpu.memory_space<vmem>>, vector<1x1x4x1xf32>
    %39 = vector.shape_cast %38 : vector<1x1x4x1xf32> to vector<4x1xf32>
    %40 = vector.shape_cast %37 : vector<4x1xf32> to vector<1x1x4x1xf32>
    tpu.vector_store %arg7[%c0_31, %c0_32, %c0_33, %c0_34], %40 {strides = array<i32>} : memref<1x1x4x1xf32, #tpu.memory_space<vmem>>, vector<1x1x4x1xf32>,
    return
  }
  func.func @transform_0(%arg0: i32, %arg1: i32, %arg2: i32) -> (i32, i32, i32) {
    %c1_i32 = arith.constant 1 : i32
    %0 = arith.muli %arg2, %c1_i32 : i32
    %1 = arith.addi %0, %arg1 : i32
    %c0_i32 = arith.constant 0 : i32
    %c0_i32_0 = arith.constant 0 : i32
    return %arg0, %c0_i32, %1 : i32, i32, i32
  }
  func.func @transform_1(%arg0: i32, %arg1: i32, %arg2: i32) -> (i32, i32, i32) {
    %c1_i32 = arith.constant 1 : i32
    %0 = arith.muli %arg2, %c1_i32 : i32
    %1 = arith.addi %0, %arg1 : i32
    %c0_i32 = arith.constant 0 : i32
    %c0_i32_0 = arith.constant 0 : i32
    return %arg0, %c0_i32, %1 : i32, i32, i32
  }
  func.func @transform_2(%arg0: i32, %arg1: i32, %arg2: i32) -> (i32, i32, i32, i32) {
    %c0_i32 = arith.constant 0 : i32
    %c0_i32_0 = arith.constant 0 : i32
    %c0_i32_1 = arith.constant 0 : i32
    return %arg0, %arg1, %c0_i32, %c0_i32_0 : i32, i32, i32, i32
  }
  func.func @transform_3(%arg0: i32, %arg1: i32, %arg2: i32) -> (i32, i32, i32, i32) {
    %c0_i32 = arith.constant 0 : i32
    %c0_i32_0 = arith.constant 0 : i32
    %c0_i32_1 = arith.constant 0 : i32
    return %arg0, %arg1, %c0_i32, %c0_i32_0 : i32, i32, i32, i32
  }
  func.func @transform_4(%arg0: i32, %arg1: i32, %arg2: i32) -> (i32, i32, i32, i32) {
    %c0_i32 = arith.constant 0 : i32
    %c0_i32_0 = arith.constant 0 : i32
    %c0_i32_1 = arith.constant 0 : i32
    return %arg0, %arg1, %c0_i32, %c0_i32_0 : i32, i32, i32, i32
  }
}

</mosaic_0001>

<bundles_post_ra>
// kernel: tpu_custom_call.1
= control target key start
LH: loop header
LB: loop body
LE: loop exit
PB: predicated region body
PF: predicated region fallthrough
CT: control target
= control target key end

     0   :  { %10 = vsyncpa [#allocation3], 0  ;;  %s887_s0 = inlined_call_operand.hbm [shape: f32[2,4,256], index: 0, kind: input, shape index: {}]   ;;  %s888_s1 = inlined_call_operand.vmem [shape: s8[2,1,256], index: 1, kind: input, shape index: {}]   ;;  %s889_s2 = inlined_call_operand.vmem [shape: f32[2,1,4,1], index: 2, kind: output, shape index: {0}]   ;;  %s890_s3 = inlined_call_operand.vmem [shape: f32[2,1,4,1], index: 3, kind: output, shape index: {1}]   ;;  %s891_s4 = inlined_call_operand.vmem [shape: f32[2,1,4,1], index: 4, kind: output, shape index: {2}]  }
   0x1   :  { %12 = vsyncpa [#allocation3 + $0x1], 0  ;;  %s762_s15 = smov 0   ;;  %s764_s16 = smov 0  }
   0x2   :  { %s766_s17 = smov 0   ;;  %s768_s18 = smov 0  }
   0x3   :  { %s770_s19 = smov 0   ;;  %s772_s20 = smov 0  }
   0x4 LB: > { %s582_s21 = sadd.s32 4294967295, %s733_s20   ;;  %s37_s22 = sadd.s32 1, %s729_s19  ;;  %s733_s20 = sphi %s772_s20, %s18_s20   ;;  %s729_s19 = sphi %s770_s19, %s899_s19   ;;  %s725_s18 = sphi %s768_s18, %s898_s18   ;;  %s721_s17 = sphi %s766_s17, %s897_s17   ;;  %s717_s16 = sphi %s764_s16, %s896_s16   ;;  %s713_s15 = sphi %s762_s15, %s895_s15  }
   0x5   : > { %p39_p0 = scmp.ge.s32.totalorder %s37_s22, 2  ;;  %s48_s23 = sadd.s32 1, %s721_s17 }
   0x6   : > { %p55_p1 = scmp.ne.s32.totalorder %s721_s17, %s717_s16  ;;  %p56_p2 = scmp.eq.s32.totalorder %s733_s20, 0 }
   0x7   : > { %s901_s22 = smov (%p39_p0, %s37_s22), 0  ;;  %p61_p4 = scmp.ne.s32.totalorder %s717_s16, %s713_s15 }
   0x8   : > { %p798_p3 = por %p56_p2, %p55_p1  ;;  %s43_s25 = ssub.s32 %s729_s19, %s901_s22 }
   0x9   : > { %p62_p5 = scmp.eq.s32.totalorder %s582_s21, 0  ;;  %p46_p6 = scmp.eq.s32.totalorder %s43_s25, 0 }
   0xa   : > { %p604_p8 = scmp.lt.s32.totalorder %s733_s20, 2  ;;  %s199_s28 = sand.u32 1, %s721_s17  }
   0xb   : > { %p805_p7 = por %p62_p5, %p61_p4  ;;  %s597_s29 = sshll.u32 %s729_s19, 7 }
   0xc   : > { %s811_s27 = scalar_select %p46_p6, %s721_s17, %s48_s23  }
   0xd   : > { %s586_s30 = sshll.u32 %s199_s28, 3  ;;  %s212_s7 = scalar_lea.hbm %s887_s0, %s597_s29 }
   0xe   : > { %s203_s8 = scalar_lea.vmem [#allocation2], %s586_s30  ;;  %p820_p9 = pnand %p604_p8, %p798_p3 }
   0xf   : > { %s214_s9 = sshll.u32 %s203_s8, 4  ;;  %p589_p10 = scmp.ge.s32.totalorder %s733_s20, 1  ;;  %s215_s9 = int_to_ptr.vmem [resolvable:$true] %s214_s9 }
  0x10   : > { %p233_p11 = scmp.lt.s32.totalorder %s733_s20, 3  ;;  %s200_s11 = scalar_lea.sflag [#allocation3], %s199_s28 }
  0x11   : > { %p657_p12 = pneg %p820_p9  ;;  %s668_s12 = scalar_lea.vmem %s215_s9, 128 }
  0x12   : > { %p669_p13 = scmp.ne.s32.totalorder %s215_s9, %s668_s12  ;;  %s735_s13 = smov [#allocation2]  }
  0x13   : > { %s673_s14 = sshll.u32 %s735_s13, 4  ;;  %s674_s14 = int_to_ptr.vmem [resolvable:$false] %s673_s14 }
  0x14   : > { %p671_p0 = pnand %p669_p13, %p657_p12  ;;  %s675_s15 = scalar_lea.vmem %s674_s14, 256 }
  0x15   : > { %p676_p2 = scmp.lt.s32.totalorder %s215_s9, %s674_s14  ;;  %p677_p3 = scmp.lt.s32.totalorder %s675_s15, %s668_s12 }
  0x16   : > { %p672_p1 = pneg %p671_p0 }
  0x17   : > { %p678_p4 = por %p677_p3, %p676_p2 }
  0x19   : > { %p679_p5 = pnand %p678_p4, %p672_p1 }
  0x1b   : > { %682 = shalt.err (!%p679_p5)
}
  0x1c   : > { %603 = dma.hbm_to_vmem [thread:$0]  (!%p820_p9), %s212_s7, 128, %s215_s9, %s200_s11  }
  0x1d   : > { %p234_p6 = pnand %p589_p10, %p233_p11 }
  0x1e   : > { %s239_s21 = sand.u32 (!%p234_p6), 1, %s717_s16  }
  0x1f   : > { %237 = sbr.rel (%p234_p6) target bundleno = 199 (0xc7), region = 28  ;;  %s590_s23 = sshll.u32 (!%p234_p6), %s239_s21, 3 }
  0x20   : > { %s240_s24 = scalar_lea.sflag (!%p234_p6), [#allocation3], %s239_s21  ;;  %s243_s25 = scalar_lea.vmem (!%p234_p6), [#allocation2], %s590_s23 }
  0x24   : > { %708 = dma.done.wait (%p805_p7), %s240_s24, 128  }
  0x25   : > { %710 = vsyncadd (%p805_p7), %s240_s24, 4294967168  ;;  %p297_p8 = scmp.lt.s32.totalorder %s725_s18, 1  ;;  %v338_v0 = vlaneseq  ;;  %vm331_vm0 = vcmask 3072   ;;  %v736_v4 = vmov 0.0   ;;  %v335_v5 = vld [vmem:[%s243_s25] sm:$0xff]  ;;  %vm364_vm1 = vcmask 1043456  }
  0x26   : > { %v374_v8 = vmul.f32 %v335_v5, %v335_v5  ;;  %v360_v12 = vcombine.high %v335_v5, %v335_v5 }
  0x27   : > { %s903_s18 = smov (!%p297_p8, %s725_s18), 1  ;;  %v339_v1 = vshrl.u32 %v338_v0, 7 }
  0x28   : > { %s591_s28 = sshll.u32 %s903_s18, 1  ;;  %s841_s29 = sshll.u32 %s903_s18, 2  ;;  %v376_v11 = vcombine.high %v374_v8, %v374_v8  ;;  %v378_v15 = vsel %vm364_vm1, %v374_v8, 0.0 }
  0x29   : > { %s303_s6 = scalar_lea.vmem %s888_s1, %s591_s28  ;;  %s850_s26 = scalar_lea.vmem %s889_s2, %s841_s29  ;;  %v342_v2 = vsub.s32 0, %v339_v1  ;;  %v346_v3 = vsub.s32 4, %v339_v1 }
  0x2a   : > { %332 = vst.msk [vmem:[%s850_s26] sm:$0xf] %vm331_vm0, %v736_v4  ;;  %v336_v6 = vld [vmem:[%s303_s6] sm:$0x3]  ;;  %v379_v16 = vsel %vm364_vm1, %v376_v11, 0.0  ;;  %s326_s10 = scalar_lea.vmem %s891_s4, %s841_s29  ;;  %s319_s13 = scalar_lea.vmem %s890_s3, %s841_s29 }
  0x2b   : > { %v337_v7 = vunpack.c.0.s8 %v336_v6  ;;  %v380_v27 = vadd.f32 %v379_v16, %v378_v15  ;;  %334 = vst.msk [vmem:[%s326_s10] sm:$0xf] %vm331_vm0, %v736_v4  ;;  %333 = vst.msk [vmem:[%s319_s13] sm:$0xf] %vm331_vm0, %v736_v4 }
  0x2d   : > { %v343_v9 = vrot.slane %v337_v7, %v342_v2  ;;  %v347_v10 = vrot.slane %v337_v7, %v346_v3 }
  0x2f   : > { %v351_v13 = vrot.slane %v343_v9, %v342_v2  ;;  %v355_v14 = vrot.slane %v347_v10, %v342_v2 }
  0x31   : > { %vm356_vm2 = vcmp.eq.s32.totalorder %v351_v13, %v339_v1  ;;  %vm357_vm3 = vcmp.eq.s32.totalorder %v355_v14, %v339_v1  ;;  %v358_v28 = vld [vmem:[%s850_s26] sm:$0xf] }
  0x32   : > { %v362_v17 = vsel %vm356_vm2, %v335_v5, 0.0  ;;  %v363_v18 = vsel %vm357_vm3, %v360_v12, 0.0  ;;  %v386_v19 = vsel %vm356_vm2, 1.0, %v736_v4  ;;  %v387_v20 = vsel %vm357_vm3, 1.0, %v736_v4  ;;  %v385_v29 = vld [vmem:[%s326_s10] sm:$0xf] }
  0x33   : > { %v365_v21 = vsel %vm364_vm1, %v362_v17, 0.0  ;;  %v366_v22 = vsel %vm364_vm1, %v363_v18, 0.0  ;;  %v388_v23 = vsel %vm364_vm1, %v386_v19, 0.0  ;;  %v389_v24 = vsel %vm364_vm1, %v387_v20, 0.0  ;;  %v373_v34 = vld [vmem:[%s319_s13] sm:$0xf] }
  0x34   : > { %v367_v25 = vadd.f32 %v366_v22, %v365_v21  ;;  %v390_v26 = vadd.f32 %v389_v24, %v388_v23 }
  0x36   : > { %368 = vadd.xlane.f32.xlu0 %v367_v25  ;;  %391 = vadd.xlane.f32.xlu1 %v390_v26 }
  0x3a   : > { %381 = vadd.xlane.f32.xlu0 %v380_v27 }
  0xbf   : > { %v369_v30 = vpop.xlane.xlu0 %368  ;;  %v392_v31 = vpop.xlane.xlu1 %391 }
  0xc0   : > { %v370_v32 = vadd.f32 %v369_v30, %v358_v28  ;;  %v393_v33 = vadd.f32 %v392_v31, %v385_v29 }
  0xc2   : > { %372 = vst.msk [vmem:[%s850_s26] sm:$0xf] %vm331_vm0, %v370_v32  ;;  %394 = vst.msk [vmem:[%s326_s10] sm:$0xf] %vm331_vm0, %v393_v33 }
  0xc3   : > { %v382_v35 = vpop.xlane.xlu0 %381 }
  0xc4   : > { %v383_v36 = vadd.f32 %v382_v35, %v373_v34 }
  0xc6   : > { %384 = vst.msk [vmem:[%s319_s13] sm:$0xf] %vm331_vm0, %v383_v36 }
  0xc7 PF: > { %s18_s20 = sadd.s32 1, %s733_s20   ;;  %s895_s15 = smov %s717_s16 }
  0xc8   : > { %p15_p7 = scmp.ge.s32.totalorder %s18_s20, 4   ;;  %s896_s16 = smov %s721_s17 }
  0xc9   : > { %s897_s17 = smov %s811_s27  ;;  %s898_s18 = smov %s729_s19 }
  0xca   : > { %s899_s19 = smov %s901_s22  ;;  %17 = sbr.rel (!%p15_p7) target bundleno = 4 (0x4), region = 99 }
  0xcf   :  { %460 = vsyncpa [#allocation3], 1 }
  0xd0   :  { %462 = vsyncpa [#allocation3 + $0x1], 1 }

</bundles_post_ra>
